<compile_context>
chip_gen: v7x
topology: tpu7x:2x2x1
jax: 0.10.0
libtpu: 0.0.40
codegen_flags: <defaults>
</compile_context>

<pallas_src>
import numpy as np
import jax
import jax.numpy as jnp
from jax.experimental import pallas as pl
from jax.experimental.pallas import tpu as pltpu


def _argmax_kernel(em_ref, idx_ref):
    # em_ref: (TILE_T, C) emission block; idx_ref: (1, TILE_T) int32 output block.
    em = em_ref[...].astype(jnp.float32)  # no-op for f32; upcast for bf16 inputs
    tile_t, C = em.shape
    # Argmax over the lane (label) axis with first-occurrence tie-break,
    # matching torch.argmax / jnp.argmax semantics.
    col = jax.lax.broadcasted_iota(jnp.int32, (tile_t, C), 1)
    mx = jnp.max(em, axis=-1, keepdims=True)                        # (TILE_T, 1)
    idx = jnp.min(jnp.where(em == mx, col, jnp.int32(C)), axis=-1)  # (TILE_T,)
    # Lane-dense writeback: one unmasked row store per tile.
    idx_ref[...] = idx.reshape(1, tile_t).astype(jnp.int32)


def _pick_tile_t(T, C, itemsize):
    """Largest time tile (multiple of 128) whose double-buffered input block
    stays within a conservative VMEM budget. Bigger tiles amortize the
    per-grid-step overhead (~0.35 us) — matters a lot for small label sets."""
    budget = 24 * 1024 * 1024  # leaves headroom under the 32 MiB scoped limit
    tile = 4096
    while tile > 128 and 2 * tile * C * itemsize > budget:
        tile //= 2
    # Don't pad a short sequence up to a huge tile.
    tile = min(tile, ((T + 127) // 128) * 128)
    return max(tile, 128)


def greedy_ctc_argmax(emission, *, tile_t=None):
    """Per-frame argmax over labels. emission: (T, C) f32/bf16 -> (T,) int32."""
    T, C = emission.shape
    if tile_t is None:
        tile_t = _pick_tile_t(T, C, emission.dtype.itemsize)
    num_tiles = pl.cdiv(T, tile_t)
    T_pad = num_tiles * tile_t
    if T_pad != T:
        # Padded rows are sliced off below, so their argmax value is irrelevant.
        emission = jnp.pad(emission, ((0, T_pad - T), (0, 0)))

    idx = pl.pallas_call(
        _argmax_kernel,
        out_shape=jax.ShapeDtypeStruct((num_tiles, tile_t), jnp.int32),
        grid=(num_tiles,),
        in_specs=[pl.BlockSpec((tile_t, C), lambda i: (i, 0))],
        out_specs=pl.BlockSpec((1, tile_t), lambda i: (i, 0)),
        compiler_params=pltpu.CompilerParams(
            # No cross-tile carry (collapse/drop-blank is host-side), so the
            # time axis is fully parallel -> megacore-shardable on v7x.
            dimension_semantics=("parallel",),
            vmem_limit_bytes=32 * 1024 * 1024,
        ),
    )(emission)
    return idx.reshape(-1)[:T]


class GreedyCTCDecoderJax:
    """JAX/Pallas port of the PyTorch GreedyCTCDecoder forward."""

    def __init__(self, labels, blank=0):
        self.labels = labels
        self.blank = blank

    def __call__(self, emission) -> str:
        # TODO(synk): unique_consecutive + blank drop + ''.join produce a Python
        # string, not a tensor, so they remain O(T) host-side scalar work.
        idx = np.asarray(jax.device_get(greedy_ctc_argmax(emission)))
        if idx.size == 0:
            return ""
        keep = np.ones(idx.shape[0], dtype=bool)
        keep[1:] = idx[1:] != idx[:-1]          # unique_consecutive
        keep &= idx != self.blank               # drop blank
        return ''.join(self.labels[int(i)] for i in idx[keep])


def _reference_decode(emission, labels, blank=0):
    # Pure-JAX/host reference reproducing the torch forward semantics.
    indices = jax.device_get(jnp.argmax(emission, axis=-1)).tolist()
    collapsed = [indices[0]] + [b for a, b in zip(indices, indices[1:]) if b != a]
    return ''.join(labels[i] for i in collapsed if i != blank)


if __name__ == "__main__":
    # Small demo consistent with the module: T=8 frames, C=32 labels (label 0 = blank).
    T, C = 8, 32
    labels = ['-'] + [chr(ord('a') + i) for i in range(C - 1)]

    key = jax.random.PRNGKey(0)
    emission = jax.random.normal(key, (T, C), dtype=jnp.float32)

    idx = greedy_ctc_argmax(emission)
    jax.block_until_ready(idx)

    decoder = GreedyCTCDecoderJax(labels, blank=0)
    out = decoder(emission)
    ref = _reference_decode(emission, labels, blank=0)
    assert out == ref, f"mismatch: kernel={out!r} ref={ref!r}"

    # Multi-tile sanity check: exercises the tiled grid, padding and the
    # lane-dense writeback path with num_tiles > 1.
    k2 = jax.random.PRNGKey(1)
    em2 = jax.random.normal(k2, (300, C), dtype=jnp.float32)
    idx2 = greedy_ctc_argmax(em2, tile_t=128)
    jax.block_until_ready(idx2)
    ref2 = jnp.argmax(em2, axis=-1).astype(jnp.int32)
    assert bool(jnp.all(idx2 == ref2)), "tiled argmax mismatch"

    # bf16 input path (upcast-in-kernel) with the auto-picked (large) tile.
    em3 = jax.random.normal(jax.random.PRNGKey(2), (1000, C), dtype=jnp.bfloat16)
    idx3 = greedy_ctc_argmax(em3)
    jax.block_until_ready(idx3)
    ref3 = jnp.argmax(em3.astype(jnp.float32), axis=-1).astype(jnp.int32)
    assert bool(jnp.all(idx3 == ref3)), "bf16 argmax mismatch"

    print("KERNEL_OK")
</pallas_src>

<mosaic_0001>
module attributes {stable_mosaic.version = 11 : i64} {
  func.func @_argmax_kernel(%arg0: i32, %arg1: memref<128x32xf32, #tpu.memory_space<vmem>>, %arg2: memref<1x128xi32, #tpu.memory_space<vmem>>) attributes {dimension_semantics = [#tpu.dimension_semantics<parallel>], iteration_bounds = array<i64: 1>, scalar_prefetch = 0 : i64, scratch_operands = 0 : i64, tpu.core_type = #tpu.core_type<tc>, window_params = [{transform_indices = @transform_0, window_bounds = array<i64: 128, 32>}, {transform_indices = @transform_1, window_bounds = array<i64: 1, 128>}]} {
    %c0 = arith.constant 0 : index
    %c0_0 = arith.constant 0 : index
    %0 = vector.load %arg1[%c0, %c0_0] : memref<128x32xf32, #tpu.memory_space<vmem>>, vector<128x32xf32>
    %1 = tpu.iota {dimensions = array<i32: 1>} : vector<128x32xi32>
    %cst = arith.constant dense<0xFF800000> : vector<128xf32>
    %2 = vector.multi_reduction <maximumf>, %0, %cst [1] : vector<128x32xf32> to vector<128xf32>
    %3 = vector.shape_cast %2 : vector<128xf32> to vector<128x1xf32>
    %4 = vector.broadcast %3 : vector<128x1xf32> to vector<128x32xf32>
    %5 = arith.cmpf oeq, %0, %4 : vector<128x32xf32>
    %c32_i32 = arith.constant 32 : i32
    %6 = vector.broadcast %c32_i32 : i32 to vector<128x32xi32>
    %7 = arith.select %5, %1, %6 : vector<128x32xi1>, vector<128x32xi32>
    %cst_1 = arith.constant dense<2147483647> : vector<128xi32>
    %8 = vector.multi_reduction <minsi>, %7, %cst_1 [1] : vector<128x32xi32> to vector<128xi32>
    %9 = vector.shape_cast %8 : vector<128xi32> to vector<1x128xi32>
    %c0_2 = arith.constant 0 : index
    %c0_3 = arith.constant 0 : index
    %10 = vector.load %arg2[%c0_2, %c0_3] : memref<1x128xi32, #tpu.memory_space<vmem>>, vector<1x128xi32>
    tpu.vector_store %arg2[%c0_2, %c0_3], %9 {strides = array<i32>} : memref<1x128xi32, #tpu.memory_space<vmem>>, vector<1x128xi32>,
    return
  }
  func.func @transform_0(%arg0: i32) -> (i32, i32) {
    %c0_i32 = arith.constant 0 : i32
    %c0_i32_0 = arith.constant 0 : i32
    return %arg0, %c0_i32 : i32, i32
  }
  func.func @transform_1(%arg0: i32) -> (i32, i32) {
    %c0_i32 = arith.constant 0 : i32
    %c0_i32_0 = arith.constant 0 : i32
    return %arg0, %c0_i32 : i32, i32
  }
}

</mosaic_0001>

<bundles_post_ra>
// kernel: tpu_custom_call.1
= control target key start
LH: loop header
LB: loop body
LE: loop exit
PB: predicated region body
PF: predicated region fallthrough
CT: control target
= control target key end

     0   :  { %vm27_vm0 = vcmask 261120   ;;  %s908_s0 = inlined_call_operand.vmem [shape: f32[128,32], index: 0, kind: input, shape index: {}]   ;;  %s909_s1 = inlined_call_operand.hbm [shape: s32[1,128], index: 1, kind: output, shape index: {}]  }
   0x1   :  { %v9_v0 = vld [vmem:[%s908_s0] sm:$0xff]  ;;  %v11_v1 = vld [vmem:[%s908_s0 + $0x10] sm:$0xff]  ;;  %v517_v2 = vld [vmem:[%s908_s0 + $0x8] sm:$0xff] }
   0x2   :  { %v28_v3 = vsel %vm27_vm0, %v9_v0, -inf  ;;  %v34_v4 = vsel %vm27_vm0, %v11_v1, -inf  ;;  %v12_v5 = vld [vmem:[%s908_s0 + $0x18] sm:$0xff]  ;;  %v31_v6 = vsel %vm27_vm0, %v517_v2, -inf  ;;  %v530_v8 = vld [vmem:[%s908_s0 + $0x20] sm:$0xff]  ;;  %v535_v9 = vld [vmem:[%s908_s0 + $0x28] sm:$0xff] }
   0x3   :  { %29 = vmax.xlane.f32.xlu0 %v28_v3  ;;  %35 = vmax.xlane.f32.xlu1 %v34_v4  ;;  %v37_v7 = vsel %vm27_vm0, %v12_v5, -inf }
   0x7   :  { %32 = vmax.xlane.f32.xlu0 %v31_v6  ;;  %38 = vmax.xlane.f32.xlu1 %v37_v7 }
   0x8   :  { %6 = vsyncpa [#allocation3], 0  ;;  %v40_v10 = vsel %vm27_vm0, %v530_v8, -inf  ;;  %v43_v11 = vsel %vm27_vm0, %v535_v9, -inf  ;;  %v544_v12 = vld [vmem:[%s908_s0 + $0x30] sm:$0xff]  ;;  %v549_v13 = vld [vmem:[%s908_s0 + $0x38] sm:$0xff]  ;;  %v25_v32 = vlaneseq }
   0x9   :  { %v46_v14 = vsel %vm27_vm0, %v544_v12, -inf  ;;  %v49_v15 = vsel %vm27_vm0, %v549_v13, -inf  ;;  %v558_v16 = vld [vmem:[%s908_s0 + $0x40] sm:$0xff]  ;;  %v563_v17 = vld [vmem:[%s908_s0 + $0x48] sm:$0xff]  ;;  %v572_v20 = vld [vmem:[%s908_s0 + $0x50] sm:$0xff] }
   0xa   :  { %v52_v18 = vsel %vm27_vm0, %v558_v16, -inf  ;;  %v55_v19 = vsel %vm27_vm0, %v563_v17, -inf  ;;  %v577_v21 = vld [vmem:[%s908_s0 + $0x58] sm:$0xff]  ;;  %v58_v22 = vsel %vm27_vm0, %v572_v20, -inf  ;;  %v586_v24 = vld [vmem:[%s908_s0 + $0x60] sm:$0xff]  ;;  %v591_v25 = vld [vmem:[%s908_s0 + $0x68] sm:$0xff] }
   0xb   :  { %41 = vmax.xlane.f32.xlu0 %v40_v10  ;;  %44 = vmax.xlane.f32.xlu1 %v43_v11  ;;  %v61_v23 = vsel %vm27_vm0, %v577_v21, -inf  ;;  %v64_v26 = vsel %vm27_vm0, %v586_v24, -inf  ;;  %v67_v27 = vsel %vm27_vm0, %v591_v25, -inf  ;;  %v600_v28 = vld [vmem:[%s908_s0 + $0x70] sm:$0xff]  ;;  %v605_v29 = vld [vmem:[%s908_s0 + $0x78] sm:$0xff]  ;;  %v612_v33 = vand.u32 127, %v25_v32 }
   0xc   :  { %v70_v30 = vsel %vm27_vm0, %v600_v28, -inf  ;;  %v73_v31 = vsel %vm27_vm0, %v605_v29, -inf  ;;  %s497_s0 = smov [#allocation2]  }
   0xd   :  { %s464_s9 = sshll.u32 %s497_s0, 4  ;;  %s465_s9 = int_to_ptr.vmem [resolvable:$true] %s464_s9 }
   0xe   :  { %s473_s10 = scalar_lea.vmem %s465_s9, 16  ;;  %s477_s11 = scalar_lea.vmem %s465_s9, 32 }
   0xf   :  { %47 = vmax.xlane.f32.xlu0 %v46_v14  ;;  %50 = vmax.xlane.f32.xlu1 %v49_v15  ;;  %p474_p0 = scmp.ne.s32.totalorder %s465_s9, %s473_s10  ;;  %p478_p1 = scmp.lt.s32.totalorder %s465_s9, %s465_s9 }
  0x10   :  { %p479_p2 = scmp.lt.s32.totalorder %s477_s11, %s473_s10 }
  0x12   :  { %p480_p3 = por %p479_p2, %p478_p1 }
  0x13   :  { %53 = vmax.xlane.f32.xlu0 %v52_v18  ;;  %56 = vmax.xlane.f32.xlu1 %v55_v19 }
  0x14   :  { %p481_p4 = pnand %p480_p3, %p474_p0 }
  0x17   :  { %59 = vmax.xlane.f32.xlu0 %v58_v22  ;;  %62 = vmax.xlane.f32.xlu1 %v61_v23 }
  0x1b   :  { %65 = vmax.xlane.f32.xlu0 %v64_v26  ;;  %68 = vmax.xlane.f32.xlu1 %v67_v27 }
  0x1f   :  { %71 = vmax.xlane.f32.xlu0 %v70_v30  ;;  %74 = vmax.xlane.f32.xlu1 %v73_v31 }
  0x90   :  { %v30_v34 = vpop.xlane.xlu0 %29  ;;  %v36_v35 = vpop.xlane.xlu1 %35 }
  0x91   :  { %vm76_vm1 = vcmp.eq.f32.partialorder %v9_v0, %v30_v34  ;;  %vm78_vm2 = vcmp.eq.f32.partialorder %v11_v1, %v36_v35 }
  0x92   :  { %v92_v36 = vsel %vm76_vm1, %v612_v33, 32  ;;  %v94_v37 = vsel %vm78_vm2, %v612_v33, 32 }
  0x93   :  { %v617_v38 = vsel %vm27_vm0, %v92_v36, 2147483647  ;;  %v620_v39 = vsel %vm27_vm0, %v94_v37, 2147483647 }
  0x94   :  { %v33_v40 = vpop.xlane.xlu0 %32  ;;  %v39_v41 = vpop.xlane.xlu1 %38  ;;  %v110_v42 = vshra.s32 %v617_v38, 16  ;;  %v140_v43 = vshra.s32 %v620_v39, 16 }
  0x95   :  { %vm77_vm3 = vcmp.eq.f32.partialorder %v517_v2, %v33_v40  ;;  %vm79_vm4 = vcmp.eq.f32.partialorder %v12_v5, %v39_v41 }
  0x96   :  { %v93_v44 = vsel %vm77_vm3, %v612_v33, 32  ;;  %v95_v45 = vsel %vm79_vm4, %v612_v33, 32  ;;  %v627_v46 = vcvt.s32.f32 %v110_v42  ;;  %v636_v51 = vcvt.s32.f32 %v140_v43 }
  0x97   :  { %v630_v47 = vsel %vm27_vm0, %v93_v44, 2147483647  ;;  %v633_v48 = vsel %vm27_vm0, %v95_v45, 2147483647 }
  0x98   :  { %113 = vmin.xlane.f32.xlu0 %v627_v46  ;;  %v42_v49 = vpop.xlane.xlu0 %41  ;;  %v45_v50 = vpop.xlane.xlu1 %44  ;;  %v125_v52 = vshra.s32 %v630_v47, 16  ;;  %v155_v53 = vshra.s32 %v633_v48, 16 }
  0x99   :  { %vm80_vm5 = vcmp.eq.f32.partialorder %v530_v8, %v42_v49  ;;  %vm81_vm6 = vcmp.eq.f32.partialorder %v535_v9, %v45_v50 }
  0x9a   :  { %v96_v54 = vsel %vm80_vm5, %v612_v33, 32  ;;  %v97_v55 = vsel %vm81_vm6, %v612_v33, 32  ;;  %v644_v56 = vcvt.s32.f32 %v125_v52  ;;  %v654_v61 = vcvt.s32.f32 %v155_v53 }
  0x9b   :  { %v647_v57 = vsel %vm27_vm0, %v96_v54, 2147483647  ;;  %v650_v58 = vsel %vm27_vm0, %v97_v55, 2147483647 }
  0x9c   :  { %143 = vmin.xlane.f32.xlu0 %v636_v51  ;;  %128 = vmin.xlane.f32.xlu1 %v644_v56  ;;  %v48_v59 = vpop.xlane.xlu0 %47  ;;  %v51_v60 = vpop.xlane.xlu1 %50  ;;  %v170_v62 = vshra.s32 %v647_v57, 16  ;;  %v185_v63 = vshra.s32 %v650_v58, 16 }
  0x9d   :  { %vm82_vm7 = vcmp.eq.f32.partialorder %v544_v12, %v48_v59  ;;  %vm83_vm8 = vcmp.eq.f32.partialorder %v549_v13, %v51_v60 }
  0x9e   :  { %v98_v0 = vsel %vm82_vm7, %v612_v33, 32  ;;  %v99_v1 = vsel %vm83_vm8, %v612_v33, 32  ;;  %v662_v2 = vcvt.s32.f32 %v170_v62  ;;  %v672_v7 = vcvt.s32.f32 %v185_v63 }
  0x9f   :  { %v665_v3 = vsel %vm27_vm0, %v98_v0, 2147483647  ;;  %v668_v4 = vsel %vm27_vm0, %v99_v1, 2147483647  ;;  %v109_v62 = vand.u32 65535, %v617_v38  ;;  %v124_v1 = vand.u32 65535, %v630_v47 }
  0xa0   :  { %158 = vmin.xlane.f32.xlu1 %v654_v61  ;;  %173 = vmin.xlane.f32.xlu0 %v662_v2  ;;  %v54_v5 = vpop.xlane.xlu0 %53  ;;  %v57_v6 = vpop.xlane.xlu1 %56  ;;  %v200_v8 = vshra.s32 %v665_v3, 16  ;;  %v215_v9 = vshra.s32 %v668_v4, 16  ;;  %v154_v38 = vand.u32 65535, %v633_v48  ;;  %v184_v48 = vand.u32 65535, %v650_v58 }
  0xa1   :  { %vm84_vm9 = vcmp.eq.f32.partialorder %v558_v16, %v54_v5  ;;  %vm85_vm10 = vcmp.eq.f32.partialorder %v563_v17, %v57_v6  ;;  %v111_v0 = vcvt.s32.f32 %v109_v62  ;;  %v139_v5 = vand.u32 65535, %v620_v39 }
  0xa2   :  { %v100_v10 = vsel %vm84_vm9, %v612_v33, 32  ;;  %v101_v11 = vsel %vm85_vm10, %v612_v33, 32  ;;  %v680_v12 = vcvt.s32.f32 %v200_v8  ;;  %v690_v18 = vcvt.s32.f32 %v215_v9 }
  0xa3   :  { %v683_v13 = vsel %vm27_vm0, %v100_v10, 2147483647  ;;  %v686_v14 = vsel %vm27_vm0, %v101_v11, 2147483647  ;;  %v126_v10 = vcvt.s32.f32 %v124_v1  ;;  %v141_v11 = vcvt.s32.f32 %v139_v5 }
  0xa4   :  { %188 = vmin.xlane.f32.xlu1 %v672_v7  ;;  %203 = vmin.xlane.f32.xlu0 %v680_v12  ;;  %v60_v15 = vpop.xlane.xlu0 %59  ;;  %v63_v16 = vpop.xlane.xlu1 %62  ;;  %v230_v17 = vshra.s32 %v683_v13, 16  ;;  %v245_v19 = vshra.s32 %v686_v14, 16  ;;  %v214_v58 = vand.u32 65535, %v668_v4  ;;  %v244_v4 = vand.u32 65535, %v686_v14 }
  0xa5   :  { %vm86_vm11 = vcmp.eq.f32.partialorder %v572_v20, %v60_v15  ;;  %vm87_vm12 = vcmp.eq.f32.partialorder %v577_v21, %v63_v16  ;;  %v169_v15 = vand.u32 65535, %v647_v57  ;;  %v199_v57 = vand.u32 65535, %v665_v3 }
  0xa6   :  { %v102_v22 = vsel %vm86_vm11, %v612_v33, 32  ;;  %v103_v23 = vsel %vm87_vm12, %v612_v33, 32  ;;  %v698_v26 = vcvt.s32.f32 %v230_v17  ;;  %v708_v34 = vcvt.s32.f32 %v245_v19 }
  0xa7   :  { %v701_v27 = vsel %vm27_vm0, %v102_v22, 2147483647  ;;  %v704_v30 = vsel %vm27_vm0, %v103_v23, 2147483647  ;;  %v156_v17 = vcvt.s32.f32 %v154_v38  ;;  %v171_v19 = vcvt.s32.f32 %v169_v15 }
  0xa8   :  { %218 = vmin.xlane.f32.xlu1 %v690_v18  ;;  %233 = vmin.xlane.f32.xlu0 %v698_v26  ;;  %v66_v31 = vpop.xlane.xlu0 %65  ;;  %v69_v20 = vpop.xlane.xlu1 %68  ;;  %v260_v21 = vshra.s32 %v701_v27, 16  ;;  %v275_v35 = vshra.s32 %v704_v30, 16  ;;  %v229_v3 = vand.u32 65535, %v683_v13  ;;  %v259_v13 = vand.u32 65535, %v701_v27 }
  0xa9   :  { %vm88_vm13 = vcmp.eq.f32.partialorder %v586_v24, %v66_v31  ;;  %vm89_vm14 = vcmp.eq.f32.partialorder %v591_v25, %v69_v20  ;;  %v186_v31 = vcvt.s32.f32 %v184_v48  ;;  %v201_v20 = vcvt.s32.f32 %v199_v57 }
  0xaa   :  { %v104_v36 = vsel %vm88_vm13, %v612_v33, 32  ;;  %v105_v37 = vsel %vm89_vm14, %v612_v33, 32  ;;  %v716_v40 = vcvt.s32.f32 %v260_v21  ;;  %v726_v44 = vcvt.s32.f32 %v275_v35 }
  0xab   :  { %v719_v41 = vsel %vm27_vm0, %v104_v36, 2147483647  ;;  %v722_v42 = vsel %vm27_vm0, %v105_v37, 2147483647  ;;  %v216_v36 = vcvt.s32.f32 %v214_v58  ;;  %v231_v37 = vcvt.s32.f32 %v229_v3 }
  0xac   :  { %248 = vmin.xlane.f32.xlu1 %v708_v34  ;;  %263 = vmin.xlane.f32.xlu0 %v716_v40  ;;  %v72_v43 = vpop.xlane.xlu0 %71  ;;  %v75_v24 = vpop.xlane.xlu1 %74  ;;  %v290_v25 = vshra.s32 %v719_v41, 16  ;;  %v305_v45 = vshra.s32 %v722_v42, 16  ;;  %v274_v14 = vand.u32 65535, %v704_v30  ;;  %v289_v27 = vand.u32 65535, %v719_v41 }
  0xad   :  { %vm90_vm15 = vcmp.eq.f32.partialorder %v600_v28, %v72_v43  ;;  %vm91_vm1 = vcmp.eq.f32.partialorder %v605_v29, %v75_v24  ;;  %v304_v30 = vand.u32 65535, %v722_v42  ;;  %v366_v58 = vadd.s32 4294967272, %v612_v33 }
  0xae   :  { %v106_v49 = vsel %vm90_vm15, %v612_v33, 32  ;;  %v107_v50 = vsel %vm91_vm1, %v612_v33, 32  ;;  %v734_v52 = vcvt.s32.f32 %v290_v25  ;;  %v744_v55 = vcvt.s32.f32 %v305_v45 }
  0xaf   :  { %v737_v53 = vsel %vm27_vm0, %v106_v49, 2147483647  ;;  %v740_v54 = vsel %vm27_vm0, %v107_v50, 2147483647  ;;  %v246_v25 = vcvt.s32.f32 %v244_v4  ;;  %v261_v45 = vcvt.s32.f32 %v259_v13 }
  0xb0   :  { %278 = vmin.xlane.f32.xlu1 %v726_v44  ;;  %293 = vmin.xlane.f32.xlu0 %v734_v52  ;;  %v320_v28 = vshra.s32 %v737_v53, 16  ;;  %v335_v29 = vshra.s32 %v740_v54, 16  ;;  %v319_v41 = vand.u32 65535, %v737_v53  ;;  %v306_v1 = vcvt.s32.f32 %v304_v30 }
  0xb1   :  { %v334_v42 = vand.u32 65535, %v740_v54  ;;  %v836_v54 = vshrl.u32 %v25_v32, 7  ;;  %v373_v3 = vadd.s32 4294967264, %v612_v33 }
  0xb2   :  { %v748_v59 = vcvt.s32.f32 %v320_v28  ;;  %v752_v60 = vcvt.s32.f32 %v335_v29  ;;  %v276_v28 = vcvt.s32.f32 %v274_v14  ;;  %v291_v29 = vcvt.s32.f32 %v289_v27 }
  0xb3   :  { %v321_v5 = vcvt.s32.f32 %v319_v41  ;;  %v376_v27 = vsub.s32 %v373_v3, %v836_v54 }
  0xb4   :  { %308 = vmin.xlane.f32.xlu1 %v744_v55  ;;  %323 = vmin.xlane.f32.xlu0 %v748_v59 }
  0xb8   :  { %338 = vmin.xlane.f32.xlu1 %v752_v60 }
 0x125   :  { %v756_v63 = vpop.xlane.xlu0 %113 }
 0x126   :  { %vm115_vm0 = vcmp.eq.f32.partialorder %v627_v46, %v756_v63 }
 0x127   :  { %v116_v6 = vsel %vm115_vm0, %v111_v0, inf  ;;  %vm357_vm0 = vcmask 130112  }
 0x128   :  { %117 = vmin.xlane.f32.xlu0 %v116_v6  ;;  %v336_v6 = vcvt.s32.f32 %v334_v42 }
 0x129   :  { %v762_v8 = vpop.xlane.xlu1 %128  ;;  %v764_v9 = vpop.xlane.xlu0 %143 }
 0x12a   :  { %vm130_vm2 = vcmp.eq.f32.partialorder %v644_v56, %v762_v8  ;;  %vm145_vm3 = vcmp.eq.f32.partialorder %v636_v51, %v764_v9 }
 0x12b   :  { %v131_v39 = vsel %vm130_vm2, %v126_v10, inf  ;;  %v146_v46 = vsel %vm145_vm3, %v141_v11, inf  ;;  %v135_v11 = vcvt.f32.s32 %v762_v8  ;;  %vm364_vm2 = vcmask 195712  }
 0x12c   :  { %132 = vmin.xlane.f32.xlu1 %v131_v39  ;;  %147 = vmin.xlane.f32.xlu0 %v146_v46  ;;  %vm371_vm3 = vcmask 261312  }
 0x12d   :  { %v772_v47 = vpop.xlane.xlu1 %158  ;;  %v774_v16 = vpop.xlane.xlu0 %173  ;;  %v136_v48 = vshll.u32 %v135_v11, 16  ;;  %v401_v11 = vadd.s32 4294967232, %v612_v33 }
 0x12e   :  { %vm160_vm4 = vcmp.eq.f32.partialorder %v654_v61, %v772_v47  ;;  %vm175_vm5 = vcmp.eq.f32.partialorder %v662_v2, %v774_v16  ;;  %v165_v38 = vcvt.f32.s32 %v772_v47  ;;  %v180_v15 = vcvt.f32.s32 %v774_v16 }
 0x12f   :  { %v161_v51 = vsel %vm160_vm4, %v156_v17, inf  ;;  %v176_v56 = vsel %vm175_vm5, %v171_v19, inf  ;;  %v350_v17 = vsub.s32 %v612_v33, %v836_v54  ;;  %v352_v19 = vadd.s32 4294967288, %v612_v33 }
 0x130   :  { %162 = vmin.xlane.f32.xlu1 %v161_v51  ;;  %177 = vmin.xlane.f32.xlu0 %v176_v56  ;;  %v166_v57 = vshll.u32 %v165_v38, 16  ;;  %v181_v51 = vshll.u32 %v180_v15, 16  ;;  %vm378_vm4 = vcmask 326912   ;;  %vm385_vm5 = vcmask 392512  }
 0x131   :  { %v782_v22 = vpop.xlane.xlu1 %188  ;;  %v784_v23 = vpop.xlane.xlu0 %203 }
 0x132   :  { %vm190_vm6 = vcmp.eq.f32.partialorder %v672_v7, %v782_v22  ;;  %vm205_vm7 = vcmp.eq.f32.partialorder %v680_v12, %v784_v23  ;;  %v195_v39 = vcvt.f32.s32 %v782_v22  ;;  %v210_v46 = vcvt.f32.s32 %v784_v23 }
 0x133   :  { %v191_v61 = vsel %vm190_vm6, %v186_v31, inf  ;;  %v206_v2 = vsel %vm205_vm7, %v201_v20, inf  ;;  %vm392_vm6 = vcmask 458112   ;;  %vm399_vm7 = vcmask 523712  }
 0x134   :  { %192 = vmin.xlane.f32.xlu1 %v191_v61  ;;  %207 = vmin.xlane.f32.xlu0 %v206_v2  ;;  %v196_v56 = vshll.u32 %v195_v39, 16  ;;  %v211_v22 = vshll.u32 %v210_v46, 16  ;;  %v355_v61 = vsub.s32 %v352_v19, %v836_v54  ;;  %v408_v19 = vadd.s32 4294967224, %v612_v33 }
 0x135   :  { %v792_v21 = vpop.xlane.xlu1 %218  ;;  %v794_v35 = vpop.xlane.xlu0 %233 }
 0x136   :  { %vm220_vm8 = vcmp.eq.f32.partialorder %v690_v18, %v792_v21  ;;  %vm235_vm9 = vcmp.eq.f32.partialorder %v698_v26, %v794_v35  ;;  %v240_v47 = vcvt.f32.s32 %v794_v35  ;;  %v411_v3 = vsub.s32 %v408_v19, %v836_v54 }
 0x137   :  { %v221_v7 = vsel %vm220_vm8, %v216_v36, inf  ;;  %v236_v12 = vsel %vm235_vm9, %v231_v37, inf  ;;  %vm406_vm8 = vcmask 589312   ;;  %vm413_vm9 = vcmask 654912  }
 0x138   :  { %222 = vmin.xlane.f32.xlu1 %v221_v7  ;;  %237 = vmin.xlane.f32.xlu0 %v236_v12  ;;  %v241_v35 = vshll.u32 %v240_v47, 16  ;;  %v380_v12 = vadd.s32 4294967256, %v612_v33 }
 0x139   :  { %v802_v43 = vpop.xlane.xlu1 %248  ;;  %v804_v24 = vpop.xlane.xlu0 %263 }
 0x13a   :  { %vm250_vm10 = vcmp.eq.f32.partialorder %v708_v34, %v802_v43  ;;  %vm265_vm11 = vcmp.eq.f32.partialorder %v716_v40, %v804_v24  ;;  %v255_v4 = vcvt.f32.s32 %v802_v43  ;;  %v383_v42 = vsub.s32 %v380_v12, %v836_v54 }
 0x13b   :  { %v251_v18 = vsel %vm250_vm10, %v246_v25, inf  ;;  %v266_v26 = vsel %vm265_vm11, %v261_v45, inf  ;;  %v369_v45 = vsub.s32 %v366_v58, %v836_v54  ;;  %vm420_vm10 = vcmask 720512  }
 0x13c   :  { %252 = vmin.xlane.f32.xlu1 %v251_v18  ;;  %267 = vmin.xlane.f32.xlu0 %v266_v26  ;;  %v387_v26 = vadd.s32 4294967248, %v612_v33  ;;  %v256_v43 = vshll.u32 %v255_v4, 16  ;;  %v422_v4 = vadd.s32 4294967208, %v612_v33  ;;  %vm427_vm11 = vcmask 786112  }
 0x13d   :  { %v812_v49 = vpop.xlane.xlu1 %278  ;;  %v814_v50 = vpop.xlane.xlu0 %293 }
 0x13e   :  { %vm280_vm12 = vcmp.eq.f32.partialorder %v726_v44, %v812_v49  ;;  %vm295_vm13 = vcmp.eq.f32.partialorder %v734_v52, %v814_v50  ;;  %v285_v46 = vcvt.f32.s32 %v812_v49 }
 0x13f   :  { %v281_v34 = vsel %vm280_vm12, %v276_v28, inf  ;;  %v296_v40 = vsel %vm295_vm13, %v291_v29, inf  ;;  %vm434_vm12 = vcmask 851712   ;;  %vm441_vm13 = vcmask 917312  }
 0x140   :  { %282 = vmin.xlane.f32.xlu1 %v281_v34  ;;  %297 = vmin.xlane.f32.xlu0 %v296_v40  ;;  %v270_v34 = vcvt.f32.s32 %v804_v24 }
 0x141   :  { %v822_v62 = vpop.xlane.xlu1 %308  ;;  %v824_v0 = vpop.xlane.xlu0 %323 }
 0x142   :  { %vm310_vm14 = vcmp.eq.f32.partialorder %v744_v55, %v822_v62  ;;  %vm325_vm15 = vcmp.eq.f32.partialorder %v748_v59, %v824_v0  ;;  %v120_v55 = vcvt.f32.s32 %v756_v63  ;;  %v150_v59 = vcvt.f32.s32 %v764_v9 }
 0x143   :  { %v311_v44 = vsel %vm310_vm14, %v306_v1, inf  ;;  %v326_v52 = vsel %vm325_vm15, %v321_v5, inf  ;;  %v359_v63 = vadd.s32 4294967280, %v612_v33  ;;  %v225_v9 = vcvt.f32.s32 %v792_v21 }
 0x144   :  { %312 = vmin.xlane.f32.xlu1 %v311_v44  ;;  %327 = vmin.xlane.f32.xlu0 %v326_v52  ;;  %v121_v8 = vshll.u32 %v120_v55, 16  ;;  %v151_v16 = vshll.u32 %v150_v59, 16  ;;  %v394_v55 = vadd.s32 4294967240, %v612_v33  ;;  %v271_v39 = vshll.u32 %v270_v34, 16 }
 0x145   :  { %v831_v53 = vpop.xlane.xlu1 %338  ;;  %v362_v36 = vsub.s32 %v359_v63, %v836_v54  ;;  %v226_v37 = vshll.u32 %v225_v9, 16  ;;  %v404_v9 = vsub.s32 %v401_v11, %v836_v54  ;;  %v436_v34 = vadd.s32 4294967192, %v612_v33 }
 0x146   :  { %vm340_vm1 = vcmp.eq.f32.partialorder %v752_v60, %v831_v53  ;;  %vm448_vm14 = vcmask 982912   ;;  %vm455_vm15 = vcmask 1048512  }
 0x147   :  { %v341_v10 = vsel %vm340_vm1, %v336_v6, inf  ;;  %v390_v6 = vsub.s32 %v387_v26, %v836_v54  ;;  %v439_v11 = vsub.s32 %v436_v34, %v836_v54 }
 0x148   :  { %342 = vmin.xlane.f32.xlu1 %v341_v10 }
 0x1b5   :  { %v118_v60 = vpop.xlane.xlu0 %117 }
 0x1b6   :  { %v119_v32 = vcvt.f32.s32 %v118_v60 }
 0x1b8   :  { %v122_v23 = vadd.s32 %v121_v8, %v119_v32  ;;  %v397_v8 = vsub.s32 %v394_v55, %v836_v54 }
 0x1b9   :  { %v133_v31 = vpop.xlane.xlu1 %132  ;;  %v148_v20 = vpop.xlane.xlu0 %147 }
 0x1ba   :  { %v134_v2 = vcvt.f32.s32 %v133_v31  ;;  %v149_v21 = vcvt.f32.s32 %v148_v20  ;;  %v351_v25 = vrot.slane %v122_v23, %v350_v17  ;;  %v286_v31 = vshll.u32 %v285_v46, 16 }
 0x1bc   :  { %v137_v13 = vadd.s32 %v136_v48, %v134_v2  ;;  %v152_v7 = vadd.s32 %v151_v16, %v149_v21  ;;  %v415_v16 = vadd.s32 4294967216, %v612_v33 }
 0x1bd   :  { %v163_v14 = vpop.xlane.xlu1 %162  ;;  %v178_v18 = vpop.xlane.xlu0 %177 }
 0x1be   :  { %v356_v28 = vrot.slane %v137_v13, %v355_v61  ;;  %v363_v29 = vrot.slane %v152_v7, %v362_v36  ;;  %v164_v30 = vcvt.f32.s32 %v163_v14  ;;  %v179_v41 = vcvt.f32.s32 %v178_v18 }
 0x1bf   :  { %v418_v36 = vsub.s32 %v415_v16, %v836_v54  ;;  %v429_v13 = vadd.s32 4294967200, %v612_v33 }
 0x1c0   :  { %v358_v40 = vsel %vm357_vm0, %v356_v28, %v351_v25  ;;  %v167_v1 = vadd.s32 %v166_v57, %v164_v30  ;;  %v182_v5 = vadd.s32 %v181_v51, %v179_v41  ;;  %v425_v28 = vsub.s32 %v422_v4, %v836_v54 }
 0x1c1   :  { %v365_v44 = vsel %vm364_vm2, %v363_v29, %v358_v40  ;;  %v193_v52 = vpop.xlane.xlu1 %192  ;;  %v208_v10 = vpop.xlane.xlu0 %207  ;;  %v432_v30 = vsub.s32 %v429_v13, %v836_v54 }
 0x1c2   :  { %v370_v59 = vrot.slane %v167_v1, %v369_v45  ;;  %v377_v24 = vrot.slane %v182_v5, %v376_v27  ;;  %v194_v38 = vcvt.f32.s32 %v193_v52  ;;  %v209_v15 = vcvt.f32.s32 %v208_v10 }
 0x1c4   :  { %v372_v60 = vsel %vm371_vm3, %v370_v59, %v365_v44  ;;  %v197_v17 = vadd.s32 %v196_v56, %v194_v38  ;;  %v212_v32 = vadd.s32 %v211_v22, %v209_v15  ;;  %v300_v56 = vcvt.f32.s32 %v814_v50 }
 0x1c5   :  { %v379_v63 = vsel %vm378_vm4, %v377_v24, %v372_v60  ;;  %v223_v48 = vpop.xlane.xlu1 %222  ;;  %v238_v47 = vpop.xlane.xlu0 %237  ;;  %v443_v44 = vadd.s32 4294967184, %v612_v33  ;;  %v450_v38 = vadd.s32 4294967176, %v612_v33 }
 0x1c6   :  { %v384_v57 = vrot.slane %v197_v17, %v383_v42  ;;  %v391_v49 = vrot.slane %v212_v32, %v390_v6  ;;  %v224_v51 = vcvt.f32.s32 %v223_v48  ;;  %v239_v23 = vcvt.f32.s32 %v238_v47 }
 0x1c7   :  { %v301_v45 = vshll.u32 %v300_v56, 16  ;;  %v446_v60 = vsub.s32 %v443_v44, %v836_v54  ;;  %v453_v47 = vsub.s32 %v450_v38, %v836_v54 }
 0x1c8   :  { %v386_v22 = vsel %vm385_vm5, %v384_v57, %v379_v63  ;;  %v227_v20 = vadd.s32 %v226_v37, %v224_v51  ;;  %v242_v58 = vadd.s32 %v241_v35, %v239_v23  ;;  %v315_v37 = vcvt.f32.s32 %v822_v62 }
 0x1c9   :  { %v393_v61 = vsel %vm392_vm6, %v391_v49, %v386_v22  ;;  %v253_v2 = vpop.xlane.xlu1 %252  ;;  %v268_v21 = vpop.xlane.xlu0 %267  ;;  %v330_v35 = vcvt.f32.s32 %v824_v0 }
 0x1ca   :  { %v398_v7 = vrot.slane %v227_v20, %v397_v8  ;;  %v405_v50 = vrot.slane %v242_v58, %v404_v9  ;;  %v254_v12 = vcvt.f32.s32 %v253_v2  ;;  %v269_v25 = vcvt.f32.s32 %v268_v21 }
 0x1cb   :  { %v316_v5 = vshll.u32 %v315_v37, 16  ;;  %v331_v42 = vshll.u32 %v330_v35, 16 }
 0x1cc   :  { %v400_v14 = vsel %vm399_vm7, %v398_v7, %v393_v61  ;;  %v257_v27 = vadd.s32 %v256_v43, %v254_v12  ;;  %v272_v18 = vadd.s32 %v271_v39, %v269_v25  ;;  %v345_v43 = vcvt.f32.s32 %v831_v53 }
 0x1cd   :  { %v407_v26 = vsel %vm406_vm8, %v405_v50, %v400_v14  ;;  %v283_v29 = vpop.xlane.xlu1 %282  ;;  %v298_v41 = vpop.xlane.xlu0 %297 }
 0x1ce   :  { %v412_v40 = vrot.slane %v257_v27, %v411_v3  ;;  %v419_v62 = vrot.slane %v272_v18, %v418_v36  ;;  %v284_v1 = vcvt.f32.s32 %v283_v29  ;;  %v299_v0 = vcvt.f32.s32 %v298_v41 }
 0x1cf   :  { %v346_v48 = vshll.u32 %v345_v43, 16 }
 0x1d0   :  { %v414_v52 = vsel %vm413_vm9, %v412_v40, %v407_v26  ;;  %v287_v6 = vadd.s32 %v286_v31, %v284_v1  ;;  %v302_v10 = vadd.s32 %v301_v45, %v299_v0 }
 0x1d1   :  { %v421_v55 = vsel %vm420_vm10, %v419_v62, %v414_v52  ;;  %v313_v59 = vpop.xlane.xlu1 %312  ;;  %v328_v24 = vpop.xlane.xlu0 %327 }
 0x1d2   :  { %v426_v15 = vrot.slane %v287_v6, %v425_v28  ;;  %v433_v39 = vrot.slane %v302_v10, %v432_v30  ;;  %v314_v46 = vcvt.f32.s32 %v313_v59  ;;  %v329_v53 = vcvt.f32.s32 %v328_v24 }
 0x1d4   :  { %v428_v17 = vsel %vm427_vm11, %v426_v15, %v421_v55  ;;  %v317_v32 = vadd.s32 %v316_v5, %v314_v46  ;;  %v332_v19 = vadd.s32 %v331_v42, %v329_v53 }
 0x1d5   :  { %v343_v63 = vpop.xlane.xlu1 %342  ;;  %v435_v8 = vsel %vm434_vm12, %v433_v39, %v428_v17 }
 0x1d6   :  { %v440_v9 = vrot.slane %v317_v32, %v439_v11  ;;  %v344_v16 = vcvt.f32.s32 %v343_v63  ;;  %v447_v57 = vrot.slane %v332_v19, %v446_v60 }
 0x1d8   :  { %v347_v33 = vadd.s32 %v346_v48, %v344_v16  ;;  %v442_v49 = vsel %vm441_vm13, %v440_v9, %v435_v8 }
 0x1d9   :  { %v449_v23 = vsel %vm448_vm14, %v447_v57, %v442_v49 }
 0x1da   :  { %v454_v51 = vrot.slane %v347_v33, %v453_v47 }
 0x1dc   :  { %v456_v31 = vsel %vm455_vm15, %v454_v51, %v449_v23 }
 0x1dd   :  { %457 = vst [vmem:[#allocation2] sm:$0x1] %v456_v31 }
 0x1de   :  { %484 = shalt.err (!%p481_p4)
}
 0x1df   :  { %s485_s14 = scalar_lea.hbm %s909_s1, 16 }
 0x1e0   :  { %p486_p5 = scmp.ne.s32.totalorder %s909_s1, %s485_s14  ;;  %p489_p6 = scmp.lt.u32.totalorder %s485_s14, %s909_s1 }
 0x1e2   :  { %p491_p7 = pnand %p489_p6, %p486_p5 }
 0x1e4   :  { %494 = shalt.err (!%p491_p7)
}
 0x1e5   :  { %467 = dma.vmem_to_hbm [thread:$0]  %s465_s9, 16, %s909_s1, [#allocation3]  }
 0x1e6   :  { %495 = dma.done.wait [#allocation3], 16  }
 0x1e7   :  { %496 = vsyncadd [#allocation3], 4294967280 }
 0x1e8   :  { %471 = vsyncpa [#allocation3], 1 }

</bundles_post_ra>
